<compile_context>
chip_gen: v6e
topology: v6e:2x2x1
jax: 0.10.0
libtpu: 0.0.40
codegen_flags: <defaults>
</compile_context>

<pallas_src>
import functools

import numpy as np
import jax
import jax.numpy as jnp
from jax import lax
from jax.experimental import pallas as pl
from jax.experimental.pallas import tpu as pltpu


# --------------------------------------------------------------------------- #
# constants / helpers
# --------------------------------------------------------------------------- #
def _shifted_dft_matrix(n):
    """Ortho-normalized DFT matrix with fftshift/ifftshift folded in (n even)."""
    assert n % 2 == 0, "shift folding assumes an even FFT size"
    # TODO(synk): odd-sized centered FFTs need the torch (n//2 + 1) shift variant.
    k = np.arange(n, dtype=np.int64)[:, None] + n // 2
    m = np.arange(n, dtype=np.int64)[None, :] + n // 2
    ang = -2.0 * np.pi * ((k * m) % n).astype(np.float64) / n
    scale = 1.0 / np.sqrt(n)
    return (np.cos(ang) * scale).astype(np.float32), (np.sin(ang) * scale).astype(np.float32)


def _pick_emitter_block(etot, w, max_lanes=256):
    """Emitter-block size for the lane-packed path.

    Only returns blocks whose lane width Eblk*W is a multiple of 128 (legal
    BlockSpec, unmasked stores) or the full packed lane axis.  Among aligned
    candidates the largest one that still leaves >= 2 grid steps is preferred
    (v7x shards the parallel grid axis over its two TensorCores).  max_lanes
    defaults to 256: one MXU pass width, bounding the kron overhead of the
    column DFT (review item).
    """
    cands = [d for d in range(1, etot + 1)
             if etot % d == 0 and (d * w) % 128 == 0 and d * w <= max_lanes]
    if not cands:
        return etot                        # whole axis: block == array dim, always legal
    multi = [d for d in cands if etot // d >= 2]
    return (multi or cands)[-1]


def _pick_wide_block(etot, h, w, budget_bytes=2 << 20):
    """Emitter-block size for the natural-layout (W % 128 == 0) path."""
    per_emitter = h * w * 4
    cands = [d for d in range(1, etot + 1)
             if etot % d == 0 and d * per_emitter <= budget_bytes]
    if not cands:
        return 1
    multi = [d for d in cands if etot // d >= 2]
    return (multi or cands)[-1]


def _compiler_params(grid_rank, vmem_est):
    kwargs = dict(dimension_semantics=("parallel",) * grid_rank)
    if vmem_est > 12 * (1 << 20):
        # Derive the scoped-VMEM cap from the actual part (64 MiB/TC on v7x,
        # 128 MiB on v5e/v6e) and leave ~15% headroom for the rest of the program.
        try:
            cap = int(pltpu.get_tpu_info().vmem_capacity_bytes)
        except Exception:
            cap = 64 << 20                 # conservative fallback (v7x per-core VMEM)
        kwargs["vmem_limit_bytes"] = int(min(max(2 * vmem_est, 32 << 20), int(0.85 * cap)))
    return pltpu.CompilerParams(**kwargs)


def _dot(a, b, precision_if_f32=lax.Precision.HIGH):
    # bf16 operands -> single MXU pass with f32 accumulation; f32 operands use
    # 3-pass HIGH (reference-accuracy path) rather than 6-pass HIGHEST.
    prec = None if a.dtype == jnp.bfloat16 else precision_if_f32
    return jnp.dot(a, b, preferred_element_type=jnp.float32, precision=prec)


# --------------------------------------------------------------------------- #
# kernels
# --------------------------------------------------------------------------- #
def _psf_kernel_packed(*refs, w, use_rones):
    """One emitter-block step in the lane-packed (H, Eblk*W) layout (W < 128)."""
    if use_rones:
        (cos_ref, sin_ref, fhr_ref, fhi_ref, bwr_ref, bwi_ref, rones_ref,
         per_ref, pei_ref, nph_ref, out_ref) = refs
    else:
        (cos_ref, sin_ref, fhr_ref, fhi_ref, bwr_ref, bwi_ref,
         per_ref, pei_ref, nph_ref, out_ref) = refs
        rones_ref = None
    f32 = jnp.float32
    mdt = fhr_ref.dtype

    # exp(1j*mask) * phase_emitter : complex multiply on the VPU, kept in f32
    # (bf16 end-to-end would double-round the cancellation-prone real part).
    cosm = cos_ref[...]                                       # (H, EW) f32, grid-invariant
    sinm = sin_ref[...]
    per = per_ref[...].astype(f32)                            # (H, EW)
    pei = pei_ref[...].astype(f32)
    zr = (cosm * per - sinm * pei).astype(mdt)
    zi = (cosm * pei + sinm * per).astype(mdt)

    # Row DFT from the left:  (H,H) @ (H,EW)  -- full MXU utilisation.
    fhr = fhr_ref[...]
    fhi = fhi_ref[...]
    tr = _dot(fhr, zr) - _dot(fhi, zi)
    ti = _dot(fhr, zi) + _dot(fhi, zr)

    # Column DFT with the block-diagonal I_Eblk (x) F_W: stays lane-dense with
    # no relayouts; EW is capped at 256 lanes so the kron overhead is bounded.
    trm = tr.astype(mdt)
    tim = ti.astype(mdt)
    bwr = bwr_ref[...]
    bwi = bwi_ref[...]
    yr = _dot(trm, bwr) - _dot(tim, bwi)
    yi = _dot(trm, bwi) + _dot(tim, bwr)

    img = yr * yr + yi * yi                                   # |centered FFT|^2, (H, EW) f32

    # Per-emitter photon totals: H reduction, then a log2(W) butterfly over each
    # emitter's W lanes on the XLU (replaces the (EW,EW) ones-matrix matmul).
    col = jnp.sum(img, axis=0, keepdims=True)                 # (1, EW)
    if use_rones:
        # Fallback for non-power-of-two W: exact block-diagonal ones matmul.
        tot = jnp.dot(col, rones_ref[...], preferred_element_type=f32,
                      precision=lax.Precision.HIGHEST)
    else:
        ew = col.shape[-1]
        lane = lax.broadcasted_iota(jnp.int32, col.shape, 1)
        tot = col
        s = 1
        while s < w:                                          # segment-aligned butterfly
            fwd = pltpu.roll(tot, shift=ew - s, axis=1)       # lane i <- lane i + s
            bwd = pltpu.roll(tot, shift=s, axis=1)            # lane i <- lane i - s
            tot = tot + jnp.where((lane & s) == 0, fwd, bwd)
            s *= 2

    # Exact divide (f32-exact photon conservation; no inf from approx recip).
    out_ref[...] = img * (nph_ref[...] / tot)


def _psf_kernel_wide(cos_ref, sin_ref, fhr_ref, fhi_ref, fwr_ref, fwi_ref,
                     per_ref, pei_ref, nph_ref, out_ref):
    """One emitter-block step in the natural (Eblk, H, W) layout (W % 128 == 0)."""
    f32 = jnp.float32
    mdt = fhr_ref.dtype
    eblk = per_ref.shape[0]

    cosm = cos_ref[...][None]                                 # (1, H, W) f32
    sinm = sin_ref[...][None]
    per = per_ref[...].astype(f32)                            # (Eblk, H, W)
    pei = pei_ref[...].astype(f32)
    zr = (cosm * per - sinm * pei).astype(mdt)
    zi = (cosm * pei + sinm * per).astype(mdt)

    prec = None if mdt == jnp.bfloat16 else lax.Precision.HIGH

    def cdot(x, m):        # column DFT: contract w, keep natural (e, h, v) order
        return jnp.einsum('ehw,wv->ehv', x, m,
                          preferred_element_type=f32, precision=prec)

    fwr = fwr_ref[...]
    fwi = fwi_ref[...]
    ur = cdot(zr, fwr) - cdot(zi, fwi)
    ui = cdot(zr, fwi) + cdot(zi, fwr)

    # Row DFT as an emitter-batched matmul: the plain (H,H) operand is broadcast
    # over the emitter axis -> no block-diagonal kron, no wasted MXU passes.
    fhr = jnp.broadcast_to(fhr_ref[...][None], (eblk,) + fhr_ref.shape)
    fhi = jnp.broadcast_to(fhi_ref[...][None], (eblk,) + fhi_ref.shape)
    urm = ur.astype(mdt)
    uim = ui.astype(mdt)

    def rdot(m, x):        # batched (E,H,H) @ (E,H,W) -> (E,H,W)
        return jnp.einsum('ehk,ekw->ehw', m, x,
                          preferred_element_type=f32, precision=prec)

    yr = rdot(fhr, urm) - rdot(fhi, uim)
    yi = rdot(fhr, uim) + rdot(fhi, urm)

    img = yr * yr + yi * yi                                   # (Eblk, H, W) f32
    tot = jnp.sum(img, axis=(1, 2), keepdims=True)            # (Eblk, 1, 1)
    out_ref[...] = img * (nph_ref[...] / tot)                 # exact per-emitter scale


# --------------------------------------------------------------------------- #
# wrappers
# --------------------------------------------------------------------------- #
def _psfs_packed(pe, nph, cosm, sinm, fhr, fhi, fwr, fwi,
                 Etot, H, W, mdt, isz, max_lanes):
    f32 = jnp.float32
    Eblk = _pick_emitter_block(Etot, W, max_lanes)
    EW = Eblk * W
    grid = (Etot // Eblk,)
    use_rones = (W & (W - 1)) != 0         # butterfly needs power-of-two segments

    # lane-major emitter packing: (Etot, H, W) -> (H, Etot*W), emitter-major lanes
    per = jnp.transpose(pe[..., 0].astype(mdt), (1, 0, 2)).reshape(H, Etot * W)
    pei = jnp.transpose(pe[..., 1].astype(mdt), (1, 0, 2)).reshape(H, Etot * W)
    nph_row = jnp.repeat(nph, W).reshape(1, Etot * W)

    cos_t = jnp.tile(cosm, (1, Eblk))                         # (H, EW) f32
    sin_t = jnp.tile(sinm, (1, Eblk))
    eye = np.eye(Eblk, dtype=np.float32)
    bwr = np.kron(eye, fwr)                                   # (EW, EW) block-diag col DFT
    bwi = np.kron(eye, fwi)

    consts = [cos_t, sin_t,
              jnp.asarray(fhr, mdt), jnp.asarray(fhi, mdt),
              jnp.asarray(bwr, mdt), jnp.asarray(bwi, mdt)]
    if use_rones:
        consts.append(jnp.asarray(np.kron(eye, np.ones((W, W), np.float32)), f32))

    # whole-array VMEM operands: staged once, not pipelined / double-buffered
    const_spec = pl.BlockSpec(memory_space=pltpu.MemorySpace.VMEM)
    slab_spec = pl.BlockSpec((H, EW), lambda eb: (0, eb))
    nph_spec = pl.BlockSpec((1, EW), lambda eb: (0, eb))

    const_bytes = 2 * H * EW * 4 + 2 * H * H * isz + 2 * EW * EW * isz \
        + (EW * EW * 4 if use_rones else 0)
    pipe_bytes = 2 * (2 * H * EW * isz) + 2 * (H * EW * 4) + 2 * (EW * 4)
    work_bytes = 12 * H * EW * 4
    vmem_est = const_bytes + pipe_bytes + work_bytes

    out = pl.pallas_call(
        functools.partial(_psf_kernel_packed, w=W, use_rones=use_rones),
        out_shape=jax.ShapeDtypeStruct((H, Etot * W), f32),
        grid=grid,
        in_specs=[const_spec] * len(consts) + [slab_spec, slab_spec, nph_spec],
        out_specs=slab_spec,
        compiler_params=_compiler_params(1, vmem_est),
    )(*consts, per, pei, nph_row)

    # lane-packed -> PyTorch layout (single XLA transpose; unavoidable when W < 128)
    return jnp.transpose(out.reshape(H, Etot, W), (1, 0, 2))


def _psfs_wide(pe, nph, cosm, sinm, fhr, fhi, fwr, fwi, Etot, H, W, mdt, isz):
    f32 = jnp.float32
    Eblk = _pick_wide_block(Etot, H, W)
    grid = (Etot // Eblk,)

    per = pe[..., 0].astype(mdt)                              # (Etot, H, W) natural layout
    pei = pe[..., 1].astype(mdt)
    nph3 = nph.reshape(Etot, 1, 1)

    const_spec = pl.BlockSpec(memory_space=pltpu.MemorySpace.VMEM)
    slab_spec = pl.BlockSpec((Eblk, H, W), lambda e: (e, 0, 0))
    nph_spec = pl.BlockSpec((Eblk, 1, 1), lambda e: (e, 0, 0))

    const_bytes = 2 * H * W * 4 + 2 * H * H * isz + 2 * W * W * isz
    pipe_bytes = 2 * (2 * Eblk * H * W * isz) + 2 * (Eblk * H * W * 4) + 2 * (Eblk * 4)
    work_bytes = (14 * Eblk * H * W + 2 * Eblk * H * H) * 4
    vmem_est = const_bytes + pipe_bytes + work_bytes

    # kernel writes the PyTorch layout directly -> no wrapper transposes at all
    return pl.pallas_call(
        _psf_kernel_wide,
        out_shape=jax.ShapeDtypeStruct((Etot, H, W), f32),
        grid=grid,
        in_specs=[const_spec] * 6 + [slab_spec, slab_spec, nph_spec],
        out_specs=slab_spec,
        compiler_params=_compiler_params(1, vmem_est),
    )(cosm, sinm,
      jnp.asarray(fhr, mdt), jnp.asarray(fhi, mdt),
      jnp.asarray(fwr, mdt), jnp.asarray(fwi, mdt),
      per, pei, nph3)


def mask_phases_to_psfs(mask, phase_emitter, nphotons, *,
                        matmul_dtype=jnp.bfloat16, max_lanes=256):
    """Pallas TPU forward pass of DeepSTORM3D's MaskPhasesToPSFs.

    mask:          (H, W)
    phase_emitter: (Nbatch, Nemitters, H, W, 2)  trailing axis = (real, imag)
    nphotons:      (Nbatch, Nemitters)
    returns        (Nbatch, Nemitters, H, W) float32
    """
    Nbatch, Nemitters, H, W, ri = phase_emitter.shape
    assert ri == 2
    f32 = jnp.float32
    isz = jnp.dtype(matmul_dtype).itemsize

    # batch and emitter axes are fully independent -> fold them together so tiny
    # problems still fill >= 128 lanes and the grid has more parallel steps.
    Etot = Nbatch * Nemitters
    pe = phase_emitter.reshape(Etot, H, W, 2)
    nph = nphotons.reshape(Etot).astype(f32)

    cosm = jnp.cos(mask.astype(f32))                          # hoisted: computed once
    sinm = jnp.sin(mask.astype(f32))
    fhr, fhi = _shifted_dft_matrix(H)
    fwr, fwi = _shifted_dft_matrix(W)

    if W % 128 == 0 and H % 8 == 0:
        out3 = _psfs_wide(pe, nph, cosm, sinm, fhr, fhi, fwr, fwi,
                          Etot, H, W, matmul_dtype, isz)
    else:
        out3 = _psfs_packed(pe, nph, cosm, sinm, fhr, fhi, fwr, fwi,
                            Etot, H, W, matmul_dtype, isz, max_lanes)
    return out3.reshape(Nbatch, Nemitters, H, W)


# --------------------------------------------------------------------------- #
# pure-JAX reference and self-test
# --------------------------------------------------------------------------- #
def _reference(mask, phase_emitter, nphotons):
    # Mirrors the PyTorch module (the emitter-axis rolls in batch_ifftshift2d /
    # batch_fftshift2d cancel exactly, so they are omitted).
    per = phase_emitter[..., 0]
    pei = phase_emitter[..., 1]
    pm = jnp.exp(1j * mask)[None, None]
    z = pm * (per + 1j * pei)
    z = jnp.fft.ifftshift(z, axes=(2, 3))
    z = jnp.fft.fftn(z, axes=(2, 3), norm="ortho")
    z = jnp.fft.fftshift(z, axes=(2, 3))
    img = jnp.abs(z) ** 2
    s = img.sum(axis=(2, 3), keepdims=True)
    return img * (nphotons[..., None, None] / s)


if __name__ == "__main__":
    def run_case(Nbatch, Nemitters, H, W, key):
        k_mask, k_phase, k_phot = jax.random.split(key, 3)
        mask = jax.random.uniform(k_mask, (H, W), jnp.float32,
                                  minval=-np.pi, maxval=np.pi)
        emit_phase = jax.random.uniform(k_phase, (Nbatch, Nemitters, H, W),
                                        jnp.float32, minval=-np.pi, maxval=np.pi)
        phase_emitter = jnp.stack([jnp.cos(emit_phase), jnp.sin(emit_phase)], axis=-1)
        nphotons = jax.random.uniform(k_phot, (Nbatch, Nemitters), jnp.float32,
                                      minval=1000.0, maxval=5000.0)

        out = jax.block_until_ready(mask_phases_to_psfs(mask, phase_emitter, nphotons))
        ref = jax.block_until_ready(_reference(mask, phase_emitter, nphotons))

        assert out.shape == (Nbatch, Nemitters, H, W)
        # tolerance sized for single-pass bf16 MXU operands with f32 accumulation
        err = float(jnp.max(jnp.abs(out - ref)) / (jnp.max(jnp.abs(ref)) + 1e-30))
        assert err < 2e-2, f"relative error too large ({H}x{W}): {err}"
        # photon count per (batch, emitter) is conserved exactly (up to f32 sums)
        sums = out.sum(axis=(2, 3))
        sum_err = float(jnp.max(jnp.abs(sums - nphotons) / nphotons))
        assert sum_err < 1e-3, f"photon-sum error too large ({H}x{W}): {sum_err}"

    key = jax.random.PRNGKey(0)
    k1, k2 = jax.random.split(key)
    run_case(2, 4, 16, 16, k1)      # lane-packed path (W < 128, batch folded into lanes)
    run_case(1, 4, 16, 128, k2)     # wide path (W % 128 == 0: no kron, no transposes)
    print("KERNEL_OK")
</pallas_src>

<mosaic_0001>
module attributes {stable_mosaic.version = 11 : i64} {
  func.func @_psf_kernel_packed(%arg0: i32, %arg1: memref<16x128xf32, #tpu.memory_space<vmem>>, %arg2: memref<16x128xf32, #tpu.memory_space<vmem>>, %arg3: memref<16x16xbf16, #tpu.memory_space<vmem>>, %arg4: memref<16x16xbf16, #tpu.memory_space<vmem>>, %arg5: memref<128x128xbf16, #tpu.memory_space<vmem>>, %arg6: memref<128x128xbf16, #tpu.memory_space<vmem>>, %arg7: memref<16x128xbf16, #tpu.memory_space<vmem>>, %arg8: memref<16x128xbf16, #tpu.memory_space<vmem>>, %arg9: memref<1x128xf32, #tpu.memory_space<vmem>>, %arg10: memref<16x128xf32, #tpu.memory_space<vmem>>) attributes {dimension_semantics = [#tpu.dimension_semantics<parallel>], iteration_bounds = array<i64: 1>, scalar_prefetch = 0 : i64, scratch_operands = 0 : i64, tpu.core_type = #tpu.core_type<tc>, window_params = [{pipeline_mode = #tpu.pipeline_mode<synchronous>, transform_indices = @transform_0, window_bounds = array<i64: 16, 128>}, {pipeline_mode = #tpu.pipeline_mode<synchronous>, transform_indices = @transform_1, window_bounds = array<i64: 16, 128>}, {pipeline_mode = #tpu.pipeline_mode<synchronous>, transform_indices = @transform_2, window_bounds = array<i64: 16, 16>}, {pipeline_mode = #tpu.pipeline_mode<synchronous>, transform_indices = @transform_3, window_bounds = array<i64: 16, 16>}, {pipeline_mode = #tpu.pipeline_mode<synchronous>, transform_indices = @transform_4, window_bounds = array<i64: 128, 128>}, {pipeline_mode = #tpu.pipeline_mode<synchronous>, transform_indices = @transform_5, window_bounds = array<i64: 128, 128>}, {transform_indices = @transform_6, window_bounds = array<i64: 16, 128>}, {transform_indices = @transform_7, window_bounds = array<i64: 16, 128>}, {transform_indices = @transform_8, window_bounds = array<i64: 1, 128>}, {transform_indices = @transform_9, window_bounds = array<i64: 16, 128>}]} {
    %c0 = arith.constant 0 : index
    %c0_0 = arith.constant 0 : index
    %0 = vector.load %arg1[%c0, %c0_0] : memref<16x128xf32, #tpu.memory_space<vmem>>, vector<16x128xf32>
    %c0_1 = arith.constant 0 : index
    %c0_2 = arith.constant 0 : index
    %1 = vector.load %arg2[%c0_1, %c0_2] : memref<16x128xf32, #tpu.memory_space<vmem>>, vector<16x128xf32>
    %c0_3 = arith.constant 0 : index
    %c0_4 = arith.constant 0 : index
    %2 = vector.load %arg7[%c0_3, %c0_4] : memref<16x128xbf16, #tpu.memory_space<vmem>>, vector<16x128xbf16>
    %3 = arith.extf %2 : vector<16x128xbf16> to vector<16x128xf32>
    %c0_5 = arith.constant 0 : index
    %c0_6 = arith.constant 0 : index
    %4 = vector.load %arg8[%c0_5, %c0_6] : memref<16x128xbf16, #tpu.memory_space<vmem>>, vector<16x128xbf16>
    %5 = arith.extf %4 : vector<16x128xbf16> to vector<16x128xf32>
    %6 = arith.mulf %0, %3 : vector<16x128xf32>
    %7 = arith.mulf %1, %5 : vector<16x128xf32>
    %8 = arith.subf %6, %7 : vector<16x128xf32>
    %9 = arith.truncf %8 : vector<16x128xf32> to vector<16x128xbf16>
    %10 = arith.mulf %0, %5 : vector<16x128xf32>
    %11 = arith.mulf %1, %3 : vector<16x128xf32>
    %12 = arith.addf %10, %11 : vector<16x128xf32>
    %13 = arith.truncf %12 : vector<16x128xf32> to vector<16x128xbf16>
    %c0_7 = arith.constant 0 : index
    %c0_8 = arith.constant 0 : index
    %14 = vector.load %arg3[%c0_7, %c0_8] : memref<16x16xbf16, #tpu.memory_space<vmem>>, vector<16x16xbf16>
    %c0_9 = arith.constant 0 : index
    %c0_10 = arith.constant 0 : index
    %15 = vector.load %arg4[%c0_9, %c0_10] : memref<16x16xbf16, #tpu.memory_space<vmem>>, vector<16x16xbf16>
    %cst = arith.constant dense<0.000000e+00> : vector<16x128xf32>
    %16 = tpu.matmul %14, %9, %cst {dimension_numbers = #tpu.dot_dimension_numbers<[1], [0], [0], [1], [0, 0, 1, 1], [], []>} : vector<16x16xbf16>, vector<16x128xbf16>, vector<16x128xf32> -> vector<16x128xf32>
    %cst_11 = arith.constant dense<0.000000e+00> : vector<16x128xf32>
    %17 = tpu.matmul %15, %13, %cst_11 {dimension_numbers = #tpu.dot_dimension_numbers<[1], [0], [0], [1], [0, 0, 1, 1], [], []>} : vector<16x16xbf16>, vector<16x128xbf16>, vector<16x128xf32> -> vector<16x128xf32>
    %18 = arith.subf %16, %17 : vector<16x128xf32>
    %cst_12 = arith.constant dense<0.000000e+00> : vector<16x128xf32>
    %19 = tpu.matmul %14, %13, %cst_12 {dimension_numbers = #tpu.dot_dimension_numbers<[1], [0], [0], [1], [0, 0, 1, 1], [], []>} : vector<16x16xbf16>, vector<16x128xbf16>, vector<16x128xf32> -> vector<16x128xf32>
    %cst_13 = arith.constant dense<0.000000e+00> : vector<16x128xf32>
    %20 = tpu.matmul %15, %9, %cst_13 {dimension_numbers = #tpu.dot_dimension_numbers<[1], [0], [0], [1], [0, 0, 1, 1], [], []>} : vector<16x16xbf16>, vector<16x128xbf16>, vector<16x128xf32> -> vector<16x128xf32>
    %21 = arith.addf %19, %20 : vector<16x128xf32>
    %22 = arith.truncf %18 : vector<16x128xf32> to vector<16x128xbf16>
    %23 = arith.truncf %21 : vector<16x128xf32> to vector<16x128xbf16>
    %c0_14 = arith.constant 0 : index
    %c0_15 = arith.constant 0 : index
    %24 = vector.load %arg5[%c0_14, %c0_15] : memref<128x128xbf16, #tpu.memory_space<vmem>>, vector<128x128xbf16>
    %c0_16 = arith.constant 0 : index
    %c0_17 = arith.constant 0 : index
    %25 = vector.load %arg6[%c0_16, %c0_17] : memref<128x128xbf16, #tpu.memory_space<vmem>>, vector<128x128xbf16>
    %cst_18 = arith.constant dense<0.000000e+00> : vector<16x128xf32>
    %26 = tpu.matmul %22, %24, %cst_18 {dimension_numbers = #tpu.dot_dimension_numbers<[1], [0], [0], [1], [0, 0, 1, 1], [], []>} : vector<16x128xbf16>, vector<128x128xbf16>, vector<16x128xf32> -> vector<16x128xf32>
    %cst_19 = arith.constant dense<0.000000e+00> : vector<16x128xf32>
    %27 = tpu.matmul %23, %25, %cst_19 {dimension_numbers = #tpu.dot_dimension_numbers<[1], [0], [0], [1], [0, 0, 1, 1], [], []>} : vector<16x128xbf16>, vector<128x128xbf16>, vector<16x128xf32> -> vector<16x128xf32>
    %28 = arith.subf %26, %27 : vector<16x128xf32>
    %cst_20 = arith.constant dense<0.000000e+00> : vector<16x128xf32>
    %29 = tpu.matmul %22, %25, %cst_20 {dimension_numbers = #tpu.dot_dimension_numbers<[1], [0], [0], [1], [0, 0, 1, 1], [], []>} : vector<16x128xbf16>, vector<128x128xbf16>, vector<16x128xf32> -> vector<16x128xf32>
    %cst_21 = arith.constant dense<0.000000e+00> : vector<16x128xf32>
    %30 = tpu.matmul %23, %24, %cst_21 {dimension_numbers = #tpu.dot_dimension_numbers<[1], [0], [0], [1], [0, 0, 1, 1], [], []>} : vector<16x128xbf16>, vector<128x128xbf16>, vector<16x128xf32> -> vector<16x128xf32>
    %31 = arith.addf %29, %30 : vector<16x128xf32>
    %32 = arith.mulf %28, %28 : vector<16x128xf32>
    %33 = arith.mulf %31, %31 : vector<16x128xf32>
    %34 = arith.addf %32, %33 : vector<16x128xf32>
    %cst_22 = arith.constant dense<0.000000e+00> : vector<128xf32>
    %35 = vector.multi_reduction <add>, %34, %cst_22 [0] : vector<16x128xf32> to vector<128xf32>
    %36 = vector.shape_cast %35 : vector<128xf32> to vector<1x128xf32>
    %37 = tpu.iota {dimensions = array<i32: 1>} : vector<1x128xi32>
    %c127_i32 = arith.constant 127 : i32
    %38 = tpu.dynamic_rotate %36 by %c127_i32 dim 1 : vector<1x128xf32>, i32 -> vector<1x128xf32>
    %c1_i32 = arith.constant 1 : i32
    %39 = tpu.dynamic_rotate %36 by %c1_i32 dim 1 : vector<1x128xf32>, i32 -> vector<1x128xf32>
    %c1_i32_23 = arith.constant 1 : i32
    %40 = vector.broadcast %c1_i32_23 : i32 to vector<1x128xi32>
    %41 = arith.andi %37, %40 : vector<1x128xi32>
    %c0_i32 = arith.constant 0 : i32
    %42 = vector.broadcast %c0_i32 : i32 to vector<1x128xi32>
    %43 = arith.cmpi eq, %41, %42 : vector<1x128xi32>
    %44 = arith.select %43, %38, %39 : vector<1x128xi1>, vector<1x128xf32>
    %45 = arith.addf %36, %44 : vector<1x128xf32>
    %c126_i32 = arith.constant 126 : i32
    %46 = tpu.dynamic_rotate %45 by %c126_i32 dim 1 : vector<1x128xf32>, i32 -> vector<1x128xf32>
    %c2_i32 = arith.constant 2 : i32
    %47 = tpu.dynamic_rotate %45 by %c2_i32 dim 1 : vector<1x128xf32>, i32 -> vector<1x128xf32>
    %c2_i32_24 = arith.constant 2 : i32
    %48 = vector.broadcast %c2_i32_24 : i32 to vector<1x128xi32>
    %49 = arith.andi %37, %48 : vector<1x128xi32>
    %c0_i32_25 = arith.constant 0 : i32
    %50 = vector.broadcast %c0_i32_25 : i32 to vector<1x128xi32>
    %51 = arith.cmpi eq, %49, %50 : vector<1x128xi32>
    %52 = arith.select %51, %46, %47 : vector<1x128xi1>, vector<1x128xf32>
    %53 = arith.addf %45, %52 : vector<1x128xf32>
    %c124_i32 = arith.constant 124 : i32
    %54 = tpu.dynamic_rotate %53 by %c124_i32 dim 1 : vector<1x128xf32>, i32 -> vector<1x128xf32>
    %c4_i32 = arith.constant 4 : i32
    %55 = tpu.dynamic_rotate %53 by %c4_i32 dim 1 : vector<1x128xf32>, i32 -> vector<1x128xf32>
    %c4_i32_26 = arith.constant 4 : i32
    %56 = vector.broadcast %c4_i32_26 : i32 to vector<1x128xi32>
    %57 = arith.andi %37, %56 : vector<1x128xi32>
    %c0_i32_27 = arith.constant 0 : i32
    %58 = vector.broadcast %c0_i32_27 : i32 to vector<1x128xi32>
    %59 = arith.cmpi eq, %57, %58 : vector<1x128xi32>
    %60 = arith.select %59, %54, %55 : vector<1x128xi1>, vector<1x128xf32>
    %61 = arith.addf %53, %60 : vector<1x128xf32>
    %c120_i32 = arith.constant 120 : i32
    %62 = tpu.dynamic_rotate %61 by %c120_i32 dim 1 : vector<1x128xf32>, i32 -> vector<1x128xf32>
    %c8_i32 = arith.constant 8 : i32
    %63 = tpu.dynamic_rotate %61 by %c8_i32 dim 1 : vector<1x128xf32>, i32 -> vector<1x128xf32>
    %c8_i32_28 = arith.constant 8 : i32
    %64 = vector.broadcast %c8_i32_28 : i32 to vector<1x128xi32>
    %65 = arith.andi %37, %64 : vector<1x128xi32>
    %c0_i32_29 = arith.constant 0 : i32
    %66 = vector.broadcast %c0_i32_29 : i32 to vector<1x128xi32>
    %67 = arith.cmpi eq, %65, %66 : vector<1x128xi32>
    %68 = arith.select %67, %62, %63 : vector<1x128xi1>, vector<1x128xf32>
    %69 = arith.addf %61, %68 : vector<1x128xf32>
    %c0_30 = arith.constant 0 : index
    %c0_31 = arith.constant 0 : index
    %70 = vector.load %arg9[%c0_30, %c0_31] : memref<1x128xf32, #tpu.memory_space<vmem>>, vector<1x128xf32>
    %71 = arith.divf %70, %69 : vector<1x128xf32>
    %72 = vector.broadcast %71 : vector<1x128xf32> to vector<16x128xf32>
    %73 = arith.mulf %34, %72 : vector<16x128xf32>
    %c0_32 = arith.constant 0 : index
    %c0_33 = arith.constant 0 : index
    %74 = vector.load %arg10[%c0_32, %c0_33] : memref<16x128xf32, #tpu.memory_space<vmem>>, vector<16x128xf32>
    tpu.vector_store %arg10[%c0_32, %c0_33], %73 {strides = array<i32>} : memref<16x128xf32, #tpu.memory_space<vmem>>, vector<16x128xf32>,
    return
  }
  func.func @transform_0(%arg0: i32) -> (i32, i32) {
    %c0_i32 = arith.constant 0 : i32
    %c0_i32_0 = arith.constant 0 : i32
    %c0_i32_1 = arith.constant 0 : i32
    return %c0_i32, %c0_i32_0 : i32, i32
  }
  func.func @transform_1(%arg0: i32) -> (i32, i32) {
    %c0_i32 = arith.constant 0 : i32
    %c0_i32_0 = arith.constant 0 : i32
    %c0_i32_1 = arith.constant 0 : i32
    return %c0_i32, %c0_i32_0 : i32, i32
  }
  func.func @transform_2(%arg0: i32) -> (i32, i32) {
    %c0_i32 = arith.constant 0 : i32
    %c0_i32_0 = arith.constant 0 : i32
    %c0_i32_1 = arith.constant 0 : i32
    return %c0_i32, %c0_i32_0 : i32, i32
  }
  func.func @transform_3(%arg0: i32) -> (i32, i32) {
    %c0_i32 = arith.constant 0 : i32
    %c0_i32_0 = arith.constant 0 : i32
    %c0_i32_1 = arith.constant 0 : i32
    return %c0_i32, %c0_i32_0 : i32, i32
  }
  func.func @transform_4(%arg0: i32) -> (i32, i32) {
    %c0_i32 = arith.constant 0 : i32
    %c0_i32_0 = arith.constant 0 : i32
    %c0_i32_1 = arith.constant 0 : i32
    return %c0_i32, %c0_i32_0 : i32, i32
  }
  func.func @transform_5(%arg0: i32) -> (i32, i32) {
    %c0_i32 = arith.constant 0 : i32
    %c0_i32_0 = arith.constant 0 : i32
    %c0_i32_1 = arith.constant 0 : i32
    return %c0_i32, %c0_i32_0 : i32, i32
  }
  func.func @transform_6(%arg0: i32) -> (i32, i32) {
    %c0_i32 = arith.constant 0 : i32
    %c0_i32_0 = arith.constant 0 : i32
    return %c0_i32, %arg0 : i32, i32
  }
  func.func @transform_7(%arg0: i32) -> (i32, i32) {
    %c0_i32 = arith.constant 0 : i32
    %c0_i32_0 = arith.constant 0 : i32
    return %c0_i32, %arg0 : i32, i32
  }
  func.func @transform_8(%arg0: i32) -> (i32, i32) {
    %c0_i32 = arith.constant 0 : i32
    %c0_i32_0 = arith.constant 0 : i32
    return %c0_i32, %arg0 : i32, i32
  }
  func.func @transform_9(%arg0: i32) -> (i32, i32) {
    %c0_i32 = arith.constant 0 : i32
    %c0_i32_0 = arith.constant 0 : i32
    return %c0_i32, %arg0 : i32, i32
  }
}

</mosaic_0001>

<bundles_post_ra>
// kernel: tpu_custom_call.1
= control target key start
LH: loop header
LB: loop body
LE: loop exit
PB: predicated region body
PF: predicated region fallthrough
CT: control target
= control target key end

     0   :  { %14 = vsyncpa [#allocation3], 0  ;;  %s1336_s0 = inlined_call_operand.hbm [shape: f32[16,128], index: 0, kind: input, shape index: {}]   ;;  %s1337_s1 = inlined_call_operand.hbm [shape: f32[16,128], index: 1, kind: input, shape index: {}]   ;;  %s1338_s2 = inlined_call_operand.hbm [shape: bf16[16,16], index: 2, kind: input, shape index: {}]   ;;  %s1339_s3 = inlined_call_operand.hbm [shape: bf16[16,16], index: 3, kind: input, shape index: {}]   ;;  %s1340_s4 = inlined_call_operand.hbm [shape: bf16[128,128], index: 4, kind: input, shape index: {}]   ;;  %s1341_s5 = inlined_call_operand.hbm [shape: bf16[128,128], index: 5, kind: input, shape index: {}]   ;;  %s1342_s6 = inlined_call_operand.vmem [shape: bf16[16,128], index: 6, kind: input, shape index: {}]   ;;  %s1343_s7 = inlined_call_operand.hbm [shape: bf16[16,128], index: 7, kind: input, shape index: {}]   ;;  %s1344_s8 = inlined_call_operand.vmem [shape: f32[1,128], index: 8, kind: input, shape index: {}]   ;;  %s1345_s9 = inlined_call_operand.hbm [shape: f32[16,128], index: 9, kind: output, shape index: {}]  }
   0x1   :  { %15 = vsyncpa [#allocation6], 0 }
   0x2   :  { %16 = vsyncpa [#allocation9], 0 }
   0x3   :  { %17 = vsyncpa [#allocation12], 0 }
   0x4   :  { %18 = vsyncpa [#allocation4], 0  ;;  %s1106_s30 = smov [#allocation5]  }
   0x5   :  { %s36_s10 = sshll.u32 %s1106_s30, 4  ;;  %s37_s10 = int_to_ptr.vmem [resolvable:$true] %s36_s10 }
   0x6   :  { %s944_s11 = scalar_lea.vmem %s37_s10, 256  ;;  %p949_p1 = scmp.lt.s32.totalorder %s37_s10, %s37_s10 }
   0x7   :  { %p945_p0 = scmp.ne.s32.totalorder %s37_s10, %s944_s11  ;;  %p950_p2 = scmp.lt.s32.totalorder %s944_s11, %s944_s11 }
   0x9   :  { %p951_p3 = por %p950_p2, %p949_p1 }
   0xb   :  { %p952_p4 = pnand %p951_p3, %p945_p0 }
   0xd   :  { %955 = shalt.err (!%p952_p4)
}
   0xe   :  { %s1107_s12 = smov 128   ;;  %s1108_s13 = smov 8  }
   0xf   :  { %42 = dma.hbm_to_vmem [thread:$0]  %s1337_s1, 256, %s37_s10, [#allocation6], %s1107_s12, %s1107_s12, %s1108_s13  }
  0x10   :  { %s1109_s16 = smov [#allocation8]   ;;  %s1110_s18 = smov [#allocation11]  }
  0x11   :  { %s60_s17 = sshll.u32 %s1109_s16, 4  ;;  %s84_s19 = sshll.u32 %s1110_s18, 4  ;;  %s61_s17 = int_to_ptr.vmem [resolvable:$true] %s60_s17  ;;  %s85_s19 = int_to_ptr.vmem [resolvable:$true] %s84_s19 }
  0x12   :  { %s964_s20 = scalar_lea.vmem %s61_s17, 128  ;;  %p969_p6 = scmp.lt.s32.totalorder %s61_s17, %s61_s17 }
  0x13   :  { %p965_p5 = scmp.ne.s32.totalorder %s61_s17, %s964_s20  ;;  %p970_p7 = scmp.lt.s32.totalorder %s964_s20, %s964_s20 }
  0x15   :  { %p971_p8 = por %p970_p7, %p969_p6 }
  0x17   :  { %p972_p9 = pnand %p971_p8, %p965_p5 }
  0x19   :  { %975 = shalt.err (!%p972_p9)
}
  0x1a   :  { %s1111_s21 = smov 64   ;;  %s1112_s22 = smov 4  }
  0x1b   :  { %66 = dma.hbm_to_vmem [thread:$0]  %s1339_s3, 128, %s61_s17, [#allocation9], %s1111_s21, %s1111_s21, %s1112_s22  }
  0x1c   :  { %s984_s1 = scalar_lea.vmem %s85_s19, 1024  ;;  %p989_p11 = scmp.lt.s32.totalorder %s85_s19, %s85_s19 }
  0x1d   :  { %p985_p10 = scmp.ne.s32.totalorder %s85_s19, %s984_s1  ;;  %p990_p12 = scmp.lt.s32.totalorder %s984_s1, %s984_s1 }
  0x1f   :  { %p991_p13 = por %p990_p12, %p989_p11 }
  0x21   :  { %p992_p0 = pnand %p991_p13, %p985_p10 }
  0x23   :  { %995 = shalt.err (!%p992_p0)
}
  0x24   :  { %90 = dma.hbm_to_vmem [thread:$0]  %s1341_s5, 1024, %s85_s19, [#allocation12], %s1111_s21, %s1111_s21, %s1112_s22  }
  0x25   :  { %s1113_s27 = smov [#allocation2]   ;;  %s1114_s29 = smov [#allocation7]  }
  0x26   :  { %s24_s28 = sshll.u32 %s1113_s27, 4  ;;  %s48_s3 = sshll.u32 %s1114_s29, 4  ;;  %s25_s28 = int_to_ptr.vmem [resolvable:$true] %s24_s28  ;;  %s49_s3 = int_to_ptr.vmem [resolvable:$true] %s48_s3 }
  0x27   :  { %s1004_s30 = scalar_lea.vmem %s25_s28, 256  ;;  %p1009_p2 = scmp.lt.s32.totalorder %s25_s28, %s25_s28 }
  0x28   :  { %p1005_p1 = scmp.ne.s32.totalorder %s25_s28, %s1004_s30  ;;  %p1010_p3 = scmp.lt.s32.totalorder %s1004_s30, %s1004_s30 }
  0x2a   :  { %p1011_p4 = por %p1010_p3, %p1009_p2 }
  0x2c   :  { %p1012_p5 = pnand %p1011_p4, %p1005_p1 }
  0x2e   :  { %1015 = shalt.err (!%p1012_p5)
}
  0x2f   :  { %30 = dma.hbm_to_vmem [thread:$0]  %s1336_s0, 256, %s25_s28, [#allocation3], %s1107_s12, %s1107_s12, %s1108_s13  }
  0x30   :  { %s1024_s5 = scalar_lea.vmem %s49_s3, 128  ;;  %p1029_p7 = scmp.lt.s32.totalorder %s49_s3, %s49_s3 }
  0x31   :  { %p1025_p6 = scmp.ne.s32.totalorder %s49_s3, %s1024_s5  ;;  %p1030_p8 = scmp.lt.s32.totalorder %s1024_s5, %s1024_s5 }
  0x33   :  { %p1031_p9 = por %p1030_p8, %p1029_p7 }
  0x35   :  { %p1032_p10 = pnand %p1031_p9, %p1025_p6 }
  0x37   :  { %1035 = shalt.err (!%p1032_p10)
}
  0x38   :  { %54 = dma.hbm_to_vmem [thread:$0]  %s1338_s2, 128, %s49_s3, [#allocation6], %s1111_s21, %s1111_s21, %s1112_s22  }
  0x39   :  { %s1115_s16 = smov [#allocation10]   ;;  %s1116_s18 = smov [#allocation13]  }
  0x3a   :  { %s72_s17 = sshll.u32 %s1115_s16, 4  ;;  %s98_s0 = sshll.u32 %s1116_s18, 4  ;;  %s73_s17 = int_to_ptr.vmem [resolvable:$true] %s72_s17  ;;  %s99_s0 = int_to_ptr.vmem [resolvable:$true] %s98_s0 }
  0x3b   :  { %s1044_s19 = scalar_lea.vmem %s73_s17, 1024  ;;  %p1049_p12 = scmp.lt.s32.totalorder %s73_s17, %s73_s17 }
  0x3c   :  { %p1045_p11 = scmp.ne.s32.totalorder %s73_s17, %s1044_s19  ;;  %p1050_p13 = scmp.lt.s32.totalorder %s1044_s19, %s1044_s19 }
  0x3e   :  { %p1051_p0 = por %p1050_p13, %p1049_p12 }
  0x40   :  { %p1052_p1 = pnand %p1051_p0, %p1045_p11 }
  0x42   :  { %1055 = shalt.err (!%p1052_p1)
}
  0x43   :  { %78 = dma.hbm_to_vmem [thread:$0]  %s1340_s4, 1024, %s73_s17, [#allocation9], %s1111_s21, %s1111_s21, %s1112_s22  }
  0x44   :  { %s1064_s2 = scalar_lea.vmem %s99_s0, 128  ;;  %p1069_p3 = scmp.lt.s32.totalorder %s99_s0, %s99_s0 }
  0x45   :  { %p1065_p2 = scmp.ne.s32.totalorder %s99_s0, %s1064_s2  ;;  %p1070_p4 = scmp.lt.s32.totalorder %s1064_s2, %s1064_s2 }
  0x47   :  { %p1071_p5 = por %p1070_p4, %p1069_p3 }
  0x49   :  { %p1072_p6 = pnand %p1071_p5, %p1065_p2 }
  0x4b   :  { %1075 = shalt.err (!%p1072_p6)
}
  0x4c   :  { %104 = dma.hbm_to_vmem [thread:$0]  %s1343_s7, 128, %s99_s0, [#allocation12], %s1111_s21, %s1111_s21, %s1112_s22  }
  0x4d   :  { %1096 = dma.done.wait [#allocation3], 256  }
  0x4e   :  { %1097 = vsyncadd [#allocation3], 4294967040 }
  0x4f   :  { %1098 = dma.done.wait [#allocation6], 384  }
  0x50   :  { %1099 = vsyncadd [#allocation6], 4294966912 }
  0x51   :  { %1100 = dma.done.wait [#allocation9], 1152  }
  0x52   :  { %1101 = vsyncadd [#allocation9], 4294966144 }
  0x53   :  { %1102 = dma.done.wait [#allocation12], 1152  }
  0x54   :  { %1103 = vsyncadd [#allocation12], 4294966144  ;;  %v1117_v0 = vmov 0.0   ;;  %vm1118_vm0 = vmmov 0   ;;  %v129_v1 = vld [vmem:[#allocation2] sm:$0xff]  ;;  %v130_v2 = vld [vmem:[#allocation2 + $0x8] sm:$0xff] }
  0x55   :  { %792 = vmatprep.subr.bf16.mxu0 %v1117_v0  ;;  %798 = vmatprep.subr.bf16.mxu1 %v1117_v0  ;;  %v131_v3 = vld [vmem:[#allocation5] sm:$0xff]  ;;  %v132_v4 = vld [vmem:[#allocation5 + $0x8] sm:$0xff]  ;;  %v741_v5 = vld [vmem:[%s1342_s6] sm:$0xff]   ;;  %vm164_vm1 = vcmask 130048   ;;  %s1119_s6 = smov 127   ;;  %s1120_s21 = smov 1  }
  0x56   :  { %794 = vmatprep.mubr.msk.bf16.mxu0 %vm1118_vm0, %v1117_v0  ;;  %800 = vmatprep.mubr.msk.bf16.mxu1 %vm1118_vm0, %v1117_v0  ;;  %v745_v6 = vld [vmem:[#allocation13] sm:$0xff]   ;;  %v742_v7 = vunpack.c.l.bf16 %v741_v5  ;;  %v743_v8 = vunpack.c.h.bf16 %v741_v5  ;;  %v916_v25 = vld [vmem:[#allocation7] sm:$0xff]   ;;  %v917_v26 = vld [vmem:[#allocation8] sm:$0xff]   ;;  %s1121_s25 = smov 126   ;;  %s1122_s26 = smov 2  }
  0x57   :  { %v746_v9 = vunpack.c.l.bf16 %v745_v6  ;;  %v747_v10 = vunpack.c.h.bf16 %v745_v6  ;;  %v1237_v27 = vld [vmem:[#allocation10 + $0x38] sm:$0xff]   ;;  %v1244_v29 = vld [vmem:[#allocation10 + $0x30] sm:$0xff]   ;;  %v1256_v31 = vld [vmem:[#allocation10 + $0x28] sm:$0xff]   ;;  %s1123_s27 = smov 124   ;;  %s1124_s28 = smov 120  }
  0x58   :  { %v141_v11 = vmul.f32 %v742_v7, %v129_v1  ;;  %v142_v12 = vmul.f32 %v743_v8, %v130_v2  ;;  %v150_v17 = vmul.f32 %v742_v7, %v131_v3  ;;  %v151_v18 = vmul.f32 %v743_v8, %v132_v4  ;;  %v1239_v28 = vld [vmem:[#allocation11 + $0x38] sm:$0xff]   ;;  %v1248_v30 = vld [vmem:[#allocation11 + $0x30] sm:$0xff]   ;;  %v1260_v32 = vld [vmem:[#allocation11 + $0x28] sm:$0xff]   ;;  %s1125_s3 = smov [#allocation14]  }
  0x59   :  { %v143_v13 = vmul.f32 %v746_v9, %v131_v3  ;;  %v144_v14 = vmul.f32 %v747_v10, %v132_v4  ;;  %v148_v15 = vmul.f32 %v746_v9, %v129_v1  ;;  %v149_v16 = vmul.f32 %v747_v10, %v130_v2  ;;  %v1264_v33 = vld [vmem:[#allocation10 + $0x20] sm:$0xff]   ;;  %v1272_v35 = vld [vmem:[#allocation10 + $0x18] sm:$0xff]   ;;  %v1278_v36 = vld [vmem:[#allocation10 + $0x10] sm:$0xff]   ;;  %s703_s30 = sshll.u32 %s1125_s3, 4  ;;  %s704_s30 = int_to_ptr.vmem [resolvable:$true] %s703_s30 }
  0x5a   :  { %v1268_v34 = vld [vmem:[#allocation11 + $0x20] sm:$0xff]   ;;  %v1283_v37 = vld [vmem:[#allocation10 + $0x8] sm:$0xff]   ;;  %v1285_v38 = vld [vmem:[#allocation11 + $0x18] sm:$0xff]   ;;  %s1076_s10 = scalar_lea.vmem %s704_s30, 256  ;;  %p1081_p8 = scmp.lt.s32.totalorder %s704_s30, %s704_s30 }
  0x5b   :  { %v145_v19 = vsub.f32 %v141_v11, %v143_v13  ;;  %v146_v20 = vsub.f32 %v142_v12, %v144_v14  ;;  %v152_v21 = vadd.f32 %v150_v17, %v148_v15  ;;  %v153_v22 = vadd.f32 %v151_v18, %v149_v16  ;;  %v930_v39 = vld [vmem:[#allocation10] sm:$0xff]   ;;  %v931_v40 = vld [vmem:[#allocation11 + $0x10] sm:$0xff]   ;;  %v932_v41 = vld [vmem:[#allocation11 + $0x8] sm:$0xff]   ;;  %p1077_p7 = scmp.ne.s32.totalorder %s704_s30, %s1076_s10  ;;  %p1082_p9 = scmp.lt.s32.totalorder %s1076_s10, %s1076_s10 }
  0x5c   :  { %v933_v42 = vld [vmem:[#allocation11] sm:$0xff]  }
  0x5d   :  { %v147_v23 = vpack.c.bf16 %v146_v20, %v145_v19  ;;  %v154_v24 = vpack.c.bf16 %v153_v22, %v152_v21  ;;  %p1083_p10 = por %p1082_p9, %p1081_p8 }
  0x5f   :  { %793 = vmatpush3.bf16.msra.mxu0 %v147_v23  ;;  %799 = vmatpush3.bf16.msra.mxu1 %v154_v24  ;;  %p1084_p11 = pnand %p1083_p10, %p1077_p7 }
  0x60   :  { %804 = vmatprep.subr.bf16.mxu0 %v1117_v0  ;;  %810 = vmatprep.subr.bf16.mxu1 %v1117_v0 }
  0x62   :  { %795 = vmatmul.mubr.msk.bf16.vlgmr.msra.gmra.mxu0 %vm164_vm1, %v916_v25  ;;  %801 = vmatmul.mubr.msk.bf16.vlgmr.msra.gmra.mxu1 %vm164_vm1, %v917_v26 }
  0x63   :  { %805 = vmatpush3.bf16.msra.mxu0 %v147_v23  ;;  %811 = vmatpush3.bf16.msra.mxu1 %v154_v24 }
  0x64   :  { %806 = vmatprep.mubr.msk.bf16.mxu0 %vm1118_vm0, %v1117_v0  ;;  %812 = vmatprep.mubr.msk.bf16.mxu1 %vm1118_vm0, %v1117_v0 }
  0x65   :  { %816 = vmatprep.subr.bf16.mxu0 %v1117_v0  ;;  %836 = vmatprep.subr.bf16.mxu1 %v1117_v0 }
  0x6a   :  { %807 = vmatmul.mubr.msk.bf16.vlgmr.msra.gmra.mxu0 %vm164_vm1, %v917_v26  ;;  %813 = vmatmul.mubr.msk.bf16.vlgmr.msra.gmra.mxu1 %vm164_vm1, %v916_v25 }
  0x6b   :  { %817 = vmatpush3.bf16.msra.mxu0 %v1237_v27  ;;  %837 = vmatpush3.bf16.msra.mxu1 %v1239_v28 }
  0x6c   :  { %818 = vmatprep.subr.bf16.mxu0 %v1117_v0  ;;  %838 = vmatprep.subr.bf16.mxu1 %v1117_v0 }
  0x6d   :  { %832 = vmatprep.mubr.msk.bf16.mxu0 %vm1118_vm0, %v1117_v0  ;;  %852 = vmatprep.mubr.msk.bf16.mxu1 %vm1118_vm0, %v1117_v0 }
  0x6f   :  { %819 = vmatpush3.bf16.msra.mxu0 %v1244_v29  ;;  %839 = vmatpush3.bf16.msra.mxu1 %v1248_v30 }
  0x70   :  { %820 = vmatprep.subr.bf16.mxu0 %v1117_v0  ;;  %840 = vmatprep.subr.bf16.mxu1 %v1117_v0 }
  0x73   :  { %821 = vmatpush3.bf16.msra.mxu0 %v1256_v31  ;;  %841 = vmatpush3.bf16.msra.mxu1 %v1260_v32 }
  0x74   :  { %822 = vmatprep.subr.bf16.mxu0 %v1117_v0  ;;  %842 = vmatprep.subr.bf16.mxu1 %v1117_v0 }
  0x77   :  { %823 = vmatpush3.bf16.msra.mxu0 %v1264_v33  ;;  %843 = vmatpush3.bf16.msra.mxu1 %v1268_v34 }
  0x78   :  { %824 = vmatprep.subr.bf16.mxu0 %v1117_v0  ;;  %844 = vmatprep.subr.bf16.mxu1 %v1117_v0 }
  0x7b   :  { %825 = vmatpush3.bf16.msra.mxu0 %v1272_v35  ;;  %845 = vmatpush3.bf16.msra.mxu1 %v1285_v38 }
  0x7c   :  { %826 = vmatprep.subr.bf16.mxu0 %v1117_v0  ;;  %846 = vmatprep.subr.bf16.mxu1 %v1117_v0 }
  0x7f   :  { %827 = vmatpush3.bf16.msra.mxu0 %v1278_v36  ;;  %847 = vmatpush3.bf16.msra.mxu1 %v931_v40 }
  0x80   :  { %828 = vmatprep.subr.bf16.mxu0 %v1117_v0  ;;  %848 = vmatprep.subr.bf16.mxu1 %v1117_v0 }
  0x83   :  { %829 = vmatpush3.bf16.msra.mxu0 %v1283_v37  ;;  %849 = vmatpush3.bf16.msra.mxu1 %v932_v41 }
  0x84   :  { %830 = vmatprep.subr.bf16.mxu0 %v1117_v0  ;;  %850 = vmatprep.subr.bf16.mxu1 %v1117_v0 }
  0x87   :  { %831 = vmatpush3.bf16.msra.mxu0 %v930_v39  ;;  %851 = vmatpush3.bf16.msra.mxu1 %v933_v42 }
  0x88   :  { %856 = vmatprep.subr.bf16.mxu0 %v1117_v0  ;;  %876 = vmatprep.subr.bf16.mxu1 %v1117_v0 }
 0x122   :  { %v202_v43 = vpop.f32.mrf.mxu0  ;;  %v251_v44 = vpop.f32.mrf.mxu1 }
 0x123   :  { %v258_v49 = vsub.f32 %v202_v43, %v251_v44 }
 0x124   :  { %v796_v45 = vpop.f32.mrf.mxu0  ;;  %v802_v46 = vpop.f32.mrf.mxu1 }
 0x126   :  { %v205_v47 = vpop.f32.mrf.mxu0  ;;  %v254_v48 = vpop.f32.mrf.mxu1 }
 0x127   :  { %v259_v50 = vsub.f32 %v205_v47, %v254_v48 }
 0x128   :  { %v797_v51 = vpop.f32.mrf.mxu0  ;;  %v803_v52 = vpop.f32.mrf.mxu1 }
 0x129   :  { %v342_v53 = vpack.c.bf16 %v259_v50, %v258_v49 }
 0x12a   :  { %v294_v54 = vpop.f32.mrf.mxu0  ;;  %v335_v55 = vpop.f32.mrf.mxu1 }
 0x12b   :  { %833 = vmatmul.mubr.bf16.vlgmr.msra.gmra.mxu0 %v342_v53  ;;  %v336_v60 = vadd.f32 %v335_v55, %v294_v54 }
 0x12c   :  { %v808_v56 = vpop.f32.mrf.mxu0  ;;  %857 = vmatpush3.bf16.msra.mxu0 %v1237_v27  ;;  %v814_v57 = vpop.f32.mrf.mxu1  ;;  %872 = vmatprep.mubr.msk.bf16.mxu0 %vm1118_vm0, %v1117_v0 }
 0x12d   :  { %858 = vmatprep.subr.bf16.mxu0 %v1117_v0  ;;  %v685_v57 = vld [vmem:[%s1344_s8] sm:$0x1] }
 0x12e   :  { %v297_v58 = vpop.f32.mrf.mxu0  ;;  %v338_v59 = vpop.f32.mrf.mxu1 }
 0x12f   :  { %v339_v61 = vadd.f32 %v338_v59, %v297_v58 }
 0x130   :  { %v809_v62 = vpop.f32.mrf.mxu0  ;;  %859 = vmatpush3.bf16.msra.mxu0 %v1244_v29  ;;  %v815_v63 = vpop.f32.mrf.mxu1 }
 0x131   :  { %v343_v1 = vpack.c.bf16 %v339_v61, %v336_v60  ;;  %860 = vmatprep.subr.bf16.mxu0 %v1117_v0 }
 0x133   :  { %853 = vmatmul.mubr.bf16.vlgmr.msra.gmra.mxu1 %v343_v1 }
 0x134   :  { %861 = vmatpush3.bf16.msra.mxu0 %v1256_v31  ;;  %877 = vmatpush3.bf16.msra.mxu1 %v1239_v28 }
 0x135   :  { %862 = vmatprep.subr.bf16.mxu0 %v1117_v0  ;;  %878 = vmatprep.subr.bf16.mxu1 %v1117_v0 }
 0x136   :  { %892 = vmatprep.mubr.msk.bf16.mxu1 %vm1118_vm0, %v1117_v0 }
 0x138   :  { %863 = vmatpush3.bf16.msra.mxu0 %v1264_v33  ;;  %879 = vmatpush3.bf16.msra.mxu1 %v1248_v30 }
 0x139   :  { %864 = vmatprep.subr.bf16.mxu0 %v1117_v0  ;;  %880 = vmatprep.subr.bf16.mxu1 %v1117_v0 }
 0x13c   :  { %865 = vmatpush3.bf16.msra.mxu0 %v1272_v35  ;;  %881 = vmatpush3.bf16.msra.mxu1 %v1260_v32 }
 0x13d   :  { %866 = vmatprep.subr.bf16.mxu0 %v1117_v0  ;;  %882 = vmatprep.subr.bf16.mxu1 %v1117_v0 }
 0x140   :  { %867 = vmatpush3.bf16.msra.mxu0 %v1278_v36  ;;  %883 = vmatpush3.bf16.msra.mxu1 %v1268_v34  ;;  %v651_v34 = vlaneseq }
 0x141   :  { %868 = vmatprep.subr.bf16.mxu0 %v1117_v0  ;;  %884 = vmatprep.subr.bf16.mxu1 %v1117_v0 }
 0x142   :  { %v652_v35 = vand.u32 127, %v651_v34  ;;  %v690_v56 = vshrl.u32 %v651_v34, 7 }
 0x144   :  { %869 = vmatpush3.bf16.msra.mxu0 %v1283_v37  ;;  %885 = vmatpush3.bf16.msra.mxu1 %v1285_v38  ;;  %v657_v36 = vand.u32 1, %v652_v35  ;;  %v673_v46 = vand.u32 4, %v652_v35  ;;  %v681_v51 = vand.u32 8, %v652_v35  ;;  %v691_v58 = vsub.s32 0, %v690_v56 }
 0x145   :  { %870 = vmatprep.subr.bf16.mxu0 %v1117_v0  ;;  %886 = vmatprep.subr.bf16.mxu1 %v1117_v0 }
 0x146   :  { %vm658_vm2 = vcmp.eq.s32.totalorder %v657_v36, 0  ;;  %vm674_vm4 = vcmp.eq.s32.totalorder %v673_v46, 0  ;;  %vm682_vm5 = vcmp.eq.s32.totalorder %v681_v51, 0 }
 0x148   :  { %871 = vmatpush3.bf16.msra.mxu0 %v930_v39  ;;  %887 = vmatpush3.bf16.msra.mxu1 %v931_v40 }
 0x149   :  { %888 = vmatprep.subr.bf16.mxu1 %v1117_v0 }
 0x14b   :  { %873 = vmatmul.mubr.bf16.vlgmr.msra.gmra.mxu0 %v343_v1 }
 0x14c   :  { %889 = vmatpush3.bf16.msra.mxu1 %v932_v41  ;;  %v665_v41 = vand.u32 2, %v652_v35 }
 0x14d   :  { %890 = vmatprep.subr.bf16.mxu1 %v1117_v0 }
 0x14e   :  { %vm666_vm3 = vcmp.eq.s32.totalorder %v665_v41, 0 }
 0x150   :  { %891 = vmatpush3.bf16.msra.mxu1 %v933_v42 }
 0x153   :  { %893 = vmatmul.mubr.bf16.vlgmr.msra.gmra.mxu1 %v342_v53 }
 0x1eb   :  { %v458_v2 = vpop.f32.mrf.mxu0 }
 0x1ed   :  { %v834_v3 = vpop.f32.mrf.mxu0 }
 0x1ef   :  { %v461_v4 = vpop.f32.mrf.mxu0 }
 0x1f1   :  { %v835_v5 = vpop.f32.mrf.mxu0 }
 0x1f3   :  { %v547_v6 = vpop.f32.mrf.mxu1 }
 0x1f4   :  { %v554_v17 = vsub.f32 %v458_v2, %v547_v6 }
 0x1f5   :  { %v854_v7 = vpop.f32.mrf.mxu1 }
 0x1f6   :  { %v638_v22 = vmul.f32 %v554_v17, %v554_v17 }
 0x1f7   :  { %v550_v8 = vpop.f32.mrf.mxu1 }
 0x1f8   :  { %v555_v18 = vsub.f32 %v461_v4, %v550_v8 }
 0x1f9   :  { %v855_v9 = vpop.f32.mrf.mxu1 }
 0x1fa   :  { %v639_v23 = vmul.f32 %v555_v18, %v555_v18 }
 0x20b   :  { %v590_v10 = vpop.f32.mrf.mxu0 }
 0x20d   :  { %v874_v11 = vpop.f32.mrf.mxu0 }
 0x20f   :  { %v593_v12 = vpop.f32.mrf.mxu0 }
 0x211   :  { %v875_v13 = vpop.f32.mrf.mxu0 }
 0x213   :  { %v631_v14 = vpop.f32.mrf.mxu1 }
 0x214   :  { %v632_v15 = vadd.f32 %v631_v14, %v590_v10 }
 0x215   :  { %v894_v16 = vpop.f32.mrf.mxu1 }
 0x216   :  { %v640_v19 = vmul.f32 %v632_v15, %v632_v15 }
 0x217   :  { %v634_v0 = vpop.f32.mrf.mxu1 }
 0x218   :  { %v635_v20 = vadd.f32 %v634_v0, %v593_v12  ;;  %v642_v25 = vadd.f32 %v640_v19, %v638_v22 }
 0x219   :  { %v895_v21 = vpop.f32.mrf.mxu1 }
 0x21a   :  { %v641_v24 = vmul.f32 %v635_v20, %v635_v20 }
 0x21c   :  { %v643_v26 = vadd.f32 %v641_v24, %v639_v23 }
 0x21e   :  { %v644_v27 = vadd.f32 %v643_v26, %v642_v25 }
 0x220   :  { %v645_v28 = vrot.slane %v644_v27, 4 }
 0x222   :  { %v646_v29 = vadd.f32 %v645_v28, %v644_v27 }
 0x224   :  { %v647_v30 = vrot.slane %v646_v29, 2 }
 0x226   :  { %v648_v31 = vadd.f32 %v647_v30, %v646_v29 }
 0x228   :  { %v649_v32 = vrot.slane %v648_v31, 1 }
 0x22a   :  { %v650_v33 = vadd.f32 %v649_v32, %v648_v31 }
 0x22c   :  { %653 = vrot.lane.b32.xlu0 %v650_v33, %s1119_s6 }
 0x230   :  { %655 = vrot.lane.b32.xlu0 %v650_v33, %s1120_s21 }
 0x29e   :  { %v654_v37 = vpop.permute.xlu0 %653 }
 0x2a2   :  { %v656_v38 = vpop.permute.xlu0 %655 }
 0x2a3   :  { %v659_v39 = vsel %vm658_vm2, %v654_v37, %v656_v38 }
 0x2a4   :  { %v660_v40 = vadd.f32 %v659_v39, %v650_v33 }
 0x2a6   :  { %661 = vrot.lane.b32.xlu1 %v660_v40, %s1121_s25 }
 0x2aa   :  { %663 = vrot.lane.b32.xlu1 %v660_v40, %s1122_s26 }
 0x318   :  { %v662_v42 = vpop.permute.xlu1 %661 }
 0x31c   :  { %v664_v43 = vpop.permute.xlu1 %663 }
 0x31d   :  { %v667_v44 = vsel %vm666_vm3, %v662_v42, %v664_v43 }
 0x31e   :  { %v668_v45 = vadd.f32 %v667_v44, %v660_v40 }
 0x320   :  { %671 = vrot.lane.b32.xlu1 %v668_v45, %s1112_s22  ;;  %669 = vrot.lane.b32.xlu0 %v668_v45, %s1123_s27 }
 0x392   :  { %v672_v47 = vpop.permute.xlu1 %671  ;;  %v670_v48 = vpop.permute.xlu0 %669 }
 0x393   :  { %v675_v49 = vsel %vm674_vm4, %v670_v48, %v672_v47 }
 0x394   :  { %v676_v50 = vadd.f32 %v675_v49, %v668_v45 }
 0x396   :  { %679 = vrot.lane.b32.xlu1 %v676_v50, %s1108_s13  ;;  %677 = vrot.lane.b32.xlu0 %v676_v50, %s1124_s28 }
 0x408   :  { %v680_v52 = vpop.permute.xlu1 %679  ;;  %v678_v53 = vpop.permute.xlu0 %677 }
 0x409   :  { %v683_v54 = vsel %vm682_vm5, %v678_v53, %v680_v52 }
 0x40a   :  { %v684_v55 = vadd.f32 %v683_v54, %v676_v50 }
 0x40c   :  { %934 = vrcp.f32 %v684_v55 }
 0x419   :  { %v935_v59 = vpop.eup %934 }
 0x41a   :  { %v687_v60 = vmul.f32 %v935_v59, %v685_v57 }
 0x41c   :  { %v692_v61 = vrot.slane %v687_v60, %v691_v58 }
 0x41e   :  { %v694_v62 = vmul.f32 %v692_v61, %v642_v25  ;;  %v695_v63 = vmul.f32 %v692_v61, %v643_v26 }
 0x420   :  { %696 = vst [vmem:[#allocation14] sm:$0xff] %v694_v62  ;;  %697 = vst [vmem:[#allocation14 + $0x8] sm:$0xff] %v695_v63 }
 0x421   :  { %1087 = shalt.err (!%p1084_p11)
}
 0x422   :  { %709 = dma.vmem_to_hbm [thread:$0]  %s704_s30, 256, %s1345_s9, [#allocation4], %s1107_s12, %s1107_s12, %s1108_s13  }
 0x423   :  { %1104 = dma.done.wait [#allocation4], 256  }
 0x424   :  { %1105 = vsyncadd [#allocation4], 4294967040 }
 0x425   :  { %713 = vsyncpa [#allocation3], 1 }
 0x426   :  { %714 = vsyncpa [#allocation6], 1 }
 0x427   :  { %715 = vsyncpa [#allocation9], 1 }
 0x428   :  { %716 = vsyncpa [#allocation12], 1 }
 0x429   :  { %717 = vsyncpa [#allocation4], 1 }

</bundles_post_ra>
